<compile_context>
chip_gen: v7x
topology: tpu7x:2x2x1
jax: 0.10.0
libtpu: 0.0.40
codegen_flags: <defaults>
</compile_context>

<pallas_src>
import inspect

import numpy as np
import jax
import jax.numpy as jnp
from jax.experimental import pallas as pl
from jax.experimental.pallas import tpu as pltpu


# ----------------------------------------------------------------------------
# Single-buffering feature probe + BlockSpec helpers.
# ----------------------------------------------------------------------------
_SINGLE_BUFFER_OK = None


def _single_buffer_supported():
    """True iff pl.Buffered(1) (single-buffered pipelined operands) works here.

    The try/except is scoped to a tiny throwaway probe kernel, so the real
    TAFF calls never swallow unrelated compile/runtime errors (review item).
    """
    global _SINGLE_BUFFER_OK
    if _SINGLE_BUFFER_OK is not None:
        return _SINGLE_BUFFER_OK
    try:
        has = (hasattr(pl, "Buffered")
               and "pipeline_mode" in inspect.signature(pl.BlockSpec).parameters)
    except (TypeError, ValueError):
        has = False
    if not has:
        _SINGLE_BUFFER_OK = False
        return False

    def _probe_kernel(x_ref, o_ref):
        o_ref[...] = x_ref[...] + 1.0

    try:
        x = jnp.arange(16 * 128, dtype=jnp.float32).reshape(16, 128)
        out = pl.pallas_call(
            _probe_kernel,
            out_shape=jax.ShapeDtypeStruct((16, 128), jnp.float32),
            grid=(2,),
            in_specs=[pl.BlockSpec((8, 128), lambda i: (i, 0),
                                   pipeline_mode=pl.Buffered(1))],
            out_specs=pl.BlockSpec((8, 128), lambda i: (i, 0)),
        )(x)
        _SINGLE_BUFFER_OK = bool(jnp.allclose(jax.block_until_ready(out), x + 1.0))
    except Exception:  # noqa: BLE001 - scoped to the feature probe only.
        _SINGLE_BUFFER_OK = False
    return _SINGLE_BUFFER_OK


def _spec(shape, index_map, single_buffer):
    """BlockSpec; single-buffered when the operand is (nearly) grid-invariant."""
    if single_buffer:
        return pl.BlockSpec(tuple(shape), index_map, pipeline_mode=pl.Buffered(1))
    return pl.BlockSpec(tuple(shape), index_map)


def _const_spec(shape, single_buffer):
    zeros = (0,) * len(shape)
    return _spec(shape, lambda *_: zeros, single_buffer)


def _vmem_limit(estimate_bytes):
    """Scoped-VMEM limit: 2x headroom, floored at 32 MiB (v5e's default is only
    16 MiB), capped at 96 MiB (slack under v5e/v6e's 128 MiB physical; anything
    needing >64 MiB would not fit v7x regardless of this cap)."""
    return int(min(max(2 * int(estimate_bytes), 32 << 20), 96 << 20))


# ----------------------------------------------------------------------------
# Tile-size heuristics (footprint aware; override via explicit arguments).
# ----------------------------------------------------------------------------
def _main_tile_bytes(W, TR, C1, D, h2, h3, single_buffer):
    """Rough per-step VMEM footprint of the main kernel (blocks + live temps)."""
    n_u = 1 if single_buffer else 2
    blocks = (2 * W * TR * C1 * 2              # x1 tile, bf16, double-buffered
              + n_u * W * (h2 + h3) * D * 2    # u2/u3 blocks, bf16
              + 2 * TR * (h2 + h3) * 2         # ah row-tiles, bf16
              + 2 * W * TR * D * 4)            # out tile, f32, double-buffered
    live = (W * TR * D * (4 + 2 + 2 + 4)       # y1 (f32), y2/y3 (bf16), out (f32)
            + W * TR * (h2 + h3) * 2)          # broadcast ah replicas (bf16)
    return blocks + live


def _choose_tile_rows(H, W, C1, D, h2, h3, single_buffer,
                      vmem_budget_bytes=40 << 20):
    """Largest TR (multiple of 8, dividing H) whose footprint fits the budget.

    Bigger TR => better MXU M-utilization in the height-interp matmuls and
    fewer grid steps.  Lower the budget (or pass tile_rows explicitly) on v7x,
    whose VMEM is 64 MiB instead of 128 MiB.
    """
    cands = [c for c in range(8, H + 1, 8) if H % c == 0]
    if not cands:
        return H
    best = cands[0]
    for tr in cands:
        if _main_tile_bytes(W, tr, C1, D, h2, h3, single_buffer) <= vmem_budget_bytes:
            best = max(best, tr)
    return best


def _choose_lowres_tile(h, w_out, D, max_block_bytes=8 << 20):
    """h-tile for kernel 1: largest divisor of h (multiple of 8, or h itself)
    whose double-buffered output block (th, W, D) bf16 stays under the cap."""
    cands = sorted({h} | {c for c in range(8, h, 8) if h % c == 0})
    best = cands[0]
    for c in cands:
        if 2 * c * w_out * D * 2 <= max_block_bytes:
            best = max(best, c)
    return best


# ----------------------------------------------------------------------------
# Kernel 1: low-res branch = 1x1 conv (BN folded) + LeakyReLU + width upsample.
# Grid = (B, h_lo // th); one step handles th low-res rows.
# ----------------------------------------------------------------------------
def _conv_upw_kernel(x_ref, wmat_ref, bias_ref, aw_ref, o_ref):
    f32, bf16 = jnp.float32, jnp.bfloat16
    leaky = lambda v: jnp.maximum(v, 0.1 * v)          # LeakyReLU(0.1)

    x = x_ref[0]                                       # (th, w_lo, C) bf16
    th, wl, C = x.shape
    Wo = aw_ref.shape[0]
    D = wmat_ref.shape[1]

    # 1x1 conv (+ folded BN) + LeakyReLU as ONE 2-D MXU matmul (M = th*w_lo).
    x2d = x.reshape(th * wl, C)                        # leading-dim merge
    y = leaky(jnp.dot(x2d, wmat_ref[...], preferred_element_type=f32)
              + bias_ref[...])                         # (th*w_lo, D) f32
    y = y.reshape(th, wl, D).astype(bf16)

    # Bilinear width upsample (align_corners=False), batched over the th rows.
    # TODO(synk): drop the aw broadcast once a 2-D x 3-D (multi-free-dim)
    # dot_general is a proven Mosaic path; the replica is only (th, W, w_lo)
    # bf16 because of the h-tiling.
    aw = jnp.broadcast_to(aw_ref[...], (th, Wo, wl))   # (th, W, w_lo) bf16
    u = jnp.einsum("hWw,hwd->hWd", aw, y, preferred_element_type=f32)
    o_ref[0] = u.astype(o_ref.dtype)                   # (th, W, D) bf16


def _conv_upw_call(x_lo, wmat, bias, a_w, w_out, single_buffer):
    B, h, wl, C = x_lo.shape
    D = wmat.shape[1]
    th = _choose_lowres_tile(h, w_out, D)
    cs = lambda s: _const_spec(s, single_buffer)

    est = (2 * th * wl * C * 2                 # input tile (bf16, double-buf)
           + 2 * th * w_out * D * 2            # output tile (bf16, double-buf)
           + th * wl * D * 4                   # conv result (f32)
           + th * w_out * (wl * 2 + D * 4)     # aw replica + upsample result
           + 2 * (C * D * 2 + D * 4 + w_out * wl * 2))   # constants
    return pl.pallas_call(
        _conv_upw_kernel,
        out_shape=jax.ShapeDtypeStruct((B, h, w_out, D), jnp.bfloat16),
        grid=(B, h // th),
        in_specs=[pl.BlockSpec((1, th, wl, C), lambda b, hi: (b, hi, 0, 0)),
                  cs((C, D)), cs((1, D)), cs((w_out, wl))],
        out_specs=pl.BlockSpec((1, th, w_out, D), lambda b, hi: (b, hi, 0, 0)),
        compiler_params=pltpu.CompilerParams(
            dimension_semantics=("parallel", "parallel"),
            vmem_limit_bytes=_vmem_limit(est)),
    )(x_lo, wmat, bias, a_w)


# ----------------------------------------------------------------------------
# Kernel 2: main fused kernel.
# Grid = (B, H // TR); one step handles a (W, TR) row-tile of the full-res map.
# ----------------------------------------------------------------------------
def _taff_fuse_kernel(x1_ref, u2_ref, u3_ref, ah2_ref, ah3_ref,
                      w1_ref, b1_ref,
                      ww1_ref, bw1_ref, ww2_ref, bw2_ref, ww3_ref, bw3_ref,
                      wm_ref, bm_ref, o_ref):
    f32, bf16 = jnp.float32, jnp.bfloat16
    leaky = lambda v: jnp.maximum(v, 0.1 * v)          # LeakyReLU(0.1)

    _, Wd, TR, C1 = x1_ref.shape
    D = w1_ref.shape[1]
    N = Wd * TR                                        # pixels in this tile

    # --- branch 1: full-res 1x1 conv (+BN folded) + LeakyReLU.
    # Leading-dim merge (W, TR, C1) -> (W*TR, C1) is layout-free (TR % 8 == 0).
    x1 = x1_ref[0].reshape(N, C1)
    y1 = leaky(jnp.dot(x1, w1_ref[...], preferred_element_type=f32)
               + b1_ref[...])                          # (N, D) f32

    # --- branches 2/3: height interpolation of the width-upsampled low-res
    # maps (separable bilinear), batched matmul over the W columns.
    # TODO(synk): drop the ah broadcast when a multi-free-dim dot_general is a
    # proven Mosaic path.  y2/y3 stay bf16 until the final sum (VMEM budget).
    def up_height(ah_ref, u_ref):
        u = u_ref[0]                                   # (W, h_lo, D) bf16
        a = jnp.broadcast_to(ah_ref[...], (Wd,) + ah_ref.shape)
        y = jnp.einsum("wrh,whd->wrd", a, u, preferred_element_type=f32)
        return y.reshape(N, D).astype(bf16)            # (N, D) bf16

    y2 = up_height(ah2_ref, u2_ref)
    y3 = up_height(ah3_ref, u3_ref)

    # --- fusion-weight branch: 3 compress convs + ONE merged logits matmul.
    a1 = leaky(jnp.dot(y1.astype(bf16), ww1_ref[...],
                       preferred_element_type=f32) + bw1_ref[...])
    a2 = leaky(jnp.dot(y2, ww2_ref[...],
                       preferred_element_type=f32) + bw2_ref[...])
    a3 = leaky(jnp.dot(y3, ww3_ref[...],
                       preferred_element_type=f32) + bw3_ref[...])
    a_cat = jnp.concatenate([a1, a2, a3], axis=-1).astype(bf16)   # (N, 3*CC)
    logits = (jnp.dot(a_cat, wm_ref[...], preferred_element_type=f32)
              + bm_ref[...])                           # (N, 3)

    # Softmax over the 3 fusion weights; divide via the EUP (approx recip).
    mx = jnp.max(logits, axis=-1, keepdims=True)
    e = jnp.exp(logits - mx)
    p = e * pl.reciprocal(jnp.sum(e, axis=-1, keepdims=True), approx=True)

    out = (y1 * p[:, 0:1]
           + y2.astype(f32) * p[:, 1:2]
           + y3.astype(f32) * p[:, 2:3])               # (N, D) f32
    o_ref[0] = out.reshape(Wd, TR, D).astype(o_ref.dtype)


# ----------------------------------------------------------------------------
# Wrapper: layout glue + pallas_calls.
# ----------------------------------------------------------------------------
def _taff_pallas_impl(x1_nchw, x2_nchw, x3_nchw, p, *, tile_rows, out_dtype,
                      single_buffer):
    B, C1, H, W = x1_nchw.shape
    _, C2, h2, w2 = x2_nchw.shape
    _, C3, h3, w3 = x3_nchw.shape
    D = p["w1"].shape[1]
    CC = p["ww1"].shape[1]

    assert H % 8 == 0 and W % 8 == 0, "H and W must be multiples of 8"
    assert 2 * h2 == H and 2 * w2 == W and 4 * h3 == H and 4 * w3 == W

    if tile_rows is None:
        tile_rows = _choose_tile_rows(H, W, C1, D, h2, h3, single_buffer)
    TR = tile_rows
    assert TR % 8 == 0 and H % TR == 0
    M = H // TR

    f32, bf16 = jnp.float32, jnp.bfloat16
    cast = lambda a: a.astype(bf16)

    # Low-res branches: conv (+BN) + LeakyReLU + width x2/x4 upsampling.
    x2_nhwc = cast(jnp.transpose(x2_nchw, (0, 2, 3, 1)))      # (B, h2, w2, C2)
    x3_nhwc = cast(jnp.transpose(x3_nchw, (0, 2, 3, 1)))      # (B, h3, w3, C3)
    u2 = _conv_upw_call(x2_nhwc, cast(p["w2"]), p["b2"], cast(p["aw2"]), W,
                        single_buffer)                        # (B, h2, W, D)
    u3 = _conv_upw_call(x3_nhwc, cast(p["w3"]), p["b3"], cast(p["aw3"]), W,
                        single_buffer)                        # (B, h3, W, D)

    # Width-major layout so the height interpolation is a batched matmul over W
    # and all in-kernel reshapes stay leading-dim-only.
    # TODO(synk): these transposes (and the final output transpose) are the
    # remaining wrapper-level HBM passes; removing them needs in-kernel
    # major-dim transposes or band-sliced u2/u3, skipped for lowering safety.
    u2_t = jnp.transpose(u2, (0, 2, 1, 3))                    # (B, W, h2, D)
    u3_t = jnp.transpose(u3, (0, 2, 1, 3))                    # (B, W, h3, D)
    x1_whc = cast(jnp.transpose(x1_nchw, (0, 3, 2, 1)))       # (B, W, H, C1)

    # Merged logits weight: concat(wm1, wm2, wm3) == the PyTorch self.weights
    # (3*CC, 3) kernel, so the three logits matmuls collapse into one.
    wm_cat = cast(jnp.concatenate([p["wm1"], p["wm2"], p["wm3"]], axis=0))

    cs = lambda s: _const_spec(s, single_buffer)
    in_specs = [
        pl.BlockSpec((1, W, TR, C1), lambda b, m: (b, 0, m, 0)),
        # u2/u3 block indices only change with b -> single-buffer when possible.
        _spec((1, W, h2, D), lambda b, m: (b, 0, 0, 0), single_buffer),
        _spec((1, W, h3, D), lambda b, m: (b, 0, 0, 0), single_buffer),
        pl.BlockSpec((TR, h2), lambda b, m: (m, 0)),
        pl.BlockSpec((TR, h3), lambda b, m: (m, 0)),
        cs((C1, D)), cs((1, D)),
        cs((D, CC)), cs((1, CC)), cs((D, CC)), cs((1, CC)), cs((D, CC)), cs((1, CC)),
        cs((3 * CC, 3)), cs((1, 3)),
    ]

    consts = (C1 * D * 2 + D * 4 + 3 * (D * CC * 2 + CC * 4)
              + 3 * CC * 3 * 2 + 3 * 4)
    est = _main_tile_bytes(W, TR, C1, D, h2, h3, single_buffer) + 2 * consts

    # NOTE: for production, pick inter_dim as a multiple of 128 so the output
    # stores are lane-dense (masked vst otherwise); D is kept as given here.
    out_whd = pl.pallas_call(
        _taff_fuse_kernel,
        out_shape=jax.ShapeDtypeStruct((B, W, H, D), out_dtype),
        grid=(B, M),     # b outer: u2/u3 blocks are DMA'd once per batch elem.
        in_specs=in_specs,
        out_specs=pl.BlockSpec((1, W, TR, D), lambda b, m: (b, 0, m, 0)),
        compiler_params=pltpu.CompilerParams(
            dimension_semantics=("parallel", "parallel"),
            vmem_limit_bytes=_vmem_limit(est)),
    )(x1_whc, u2_t, u3_t, cast(p["ah2"]), cast(p["ah3"]),
      cast(p["w1"]), p["b1"],
      cast(p["ww1"]), p["bw1"], cast(p["ww2"]), p["bw2"],
      cast(p["ww3"]), p["bw3"],
      wm_cat, p["bm"])

    return jnp.transpose(out_whd, (0, 3, 2, 1))               # (B, D, H, W)


def taff_pallas(x1_nchw, x2_nchw, x3_nchw, params, *, tile_rows=None,
                out_dtype=jnp.float32):
    # out_dtype=jnp.bfloat16 halves the output HBM stream if the downstream
    # consumer tolerates it; f32 kept as the default to match the PyTorch
    # module's output dtype.
    return _taff_pallas_impl(x1_nchw, x2_nchw, x3_nchw, params,
                             tile_rows=tile_rows, out_dtype=out_dtype,
                             single_buffer=_single_buffer_supported())


# ----------------------------------------------------------------------------
# Parameter construction (deterministic, synthetic) + helpers.
# ----------------------------------------------------------------------------
def _bilinear_1d_matrix(in_size, out_size):
    """1-D weights matching F.interpolate(mode='bilinear', align_corners=False)."""
    in_size, out_size = int(in_size), int(out_size)
    A = np.zeros((out_size, in_size), dtype=np.float32)
    scale = in_size / out_size
    for o in range(out_size):
        src = max((o + 0.5) * scale - 0.5, 0.0)
        i0 = min(int(np.floor(src)), in_size - 1)
        i1 = min(i0 + 1, in_size - 1)
        w = src - i0
        A[o, i0] += 1.0 - w
        A[o, i1] += w
    return A


def _fold_bn(w, gamma, beta, mean, var, eps=1e-5):
    scale = gamma / jnp.sqrt(var + eps)
    return w * scale[None, :], (beta - mean * scale)[None, :]


def _conv_bn_params(key, cin, cout):
    kw, kg, kb, km, kv = jax.random.split(key, 5)
    w = jax.random.normal(kw, (cin, cout), jnp.float32) / np.sqrt(cin)
    gamma = 1.0 + 0.1 * jax.random.normal(kg, (cout,), jnp.float32)
    beta = 0.1 * jax.random.normal(kb, (cout,), jnp.float32)
    mean = 0.1 * jax.random.normal(km, (cout,), jnp.float32)
    var = jax.random.uniform(kv, (cout,), jnp.float32, minval=0.5, maxval=1.5)
    return _fold_bn(w, gamma, beta, mean, var)


def make_params(key, embed_dims, inter_dim, compress_c, H, W):
    C1, C2, C3 = embed_dims[2], embed_dims[1], embed_dims[0]
    h2, w2 = H // 2, W // 2
    h3, w3 = H // 4, W // 4
    ks = jax.random.split(key, 8)
    w1, b1 = _conv_bn_params(ks[0], C1, inter_dim)
    w2c, b2 = _conv_bn_params(ks[1], C2, inter_dim)
    w3c, b3 = _conv_bn_params(ks[2], C3, inter_dim)
    ww1, bw1 = _conv_bn_params(ks[3], inter_dim, compress_c)
    ww2, bw2 = _conv_bn_params(ks[4], inter_dim, compress_c)
    ww3, bw3 = _conv_bn_params(ks[5], inter_dim, compress_c)
    wm = jax.random.normal(ks[6], (3 * compress_c, 3), jnp.float32) / np.sqrt(
        3 * compress_c)
    bm = 0.1 * jax.random.normal(ks[7], (1, 3), jnp.float32)

    # Tiny 1-D bilinear matrices (separable interpolation).
    ah2 = jnp.asarray(_bilinear_1d_matrix(h2, H))   # (H, h2)
    aw2 = jnp.asarray(_bilinear_1d_matrix(w2, W))   # (W, w2)
    ah3 = jnp.asarray(_bilinear_1d_matrix(h3, H))   # (H, h3)
    aw3 = jnp.asarray(_bilinear_1d_matrix(w3, W))   # (W, w3)

    return dict(w1=w1, b1=b1, w2=w2c, b2=b2, w3=w3c, b3=b3,
                ww1=ww1, bw1=bw1, ww2=ww2, bw2=bw2, ww3=ww3, bw3=bw3,
                wm1=wm[:compress_c], wm2=wm[compress_c:2 * compress_c],
                wm3=wm[2 * compress_c:], bm=bm,
                ah2=ah2, aw2=aw2, ah3=ah3, aw3=aw3)


# ----------------------------------------------------------------------------
# Pure-JAX reference: same folded params / bf16 casts, but DENSE kron
# interpolation (cross-checks the separable rewrite and its index ordering).
# ----------------------------------------------------------------------------
def taff_reference(x1_nchw, x2_nchw, x3_nchw, p):
    f32, bf16 = jnp.float32, jnp.bfloat16
    leaky = lambda v: jnp.maximum(v, 0.1 * v)
    B, _, H, W = x1_nchw.shape
    D = p["w1"].shape[1]

    flat = lambda x: jnp.transpose(x, (0, 2, 3, 1)).reshape(
        x.shape[0], x.shape[2] * x.shape[3], x.shape[1])
    x1f, x2f, x3f = flat(x1_nchw), flat(x2_nchw), flat(x3_nchw)

    pdot = lambda a, b: jnp.einsum("bnc,cd->bnd", a.astype(bf16),
                                   b.astype(bf16), preferred_element_type=f32)
    y1 = leaky(pdot(x1f, p["w1"]) + p["b1"])
    y2 = leaky(pdot(x2f, p["w2"]) + p["b2"])
    y3 = leaky(pdot(x3f, p["w3"]) + p["b3"])

    m2 = jnp.kron(p["ah2"], p["aw2"])              # (HW, h2*w2)
    m4 = jnp.kron(p["ah3"], p["aw3"])              # (HW, h3*w3)
    up = lambda m, y: jnp.einsum("mn,bnd->bmd", m, y.astype(bf16).astype(f32))
    y2 = up(m2, y2)
    y3 = up(m4, y3)

    a1 = leaky(pdot(y1, p["ww1"]) + p["bw1"])
    a2 = leaky(pdot(y2, p["ww2"]) + p["bw2"])
    a3 = leaky(pdot(y3, p["ww3"]) + p["bw3"])
    logits = (jnp.einsum("bnc,cd->bnd", a1, p["wm1"])
              + jnp.einsum("bnc,cd->bnd", a2, p["wm2"])
              + jnp.einsum("bnc,cd->bnd", a3, p["wm3"]) + p["bm"])
    prob = jax.nn.softmax(logits, axis=-1)
    out = (y1 * prob[..., 0:1] + y2 * prob[..., 1:2] + y3 * prob[..., 2:3])
    return jnp.transpose(out.reshape(B, H, W, D), (0, 3, 1, 2))


# ----------------------------------------------------------------------------
if __name__ == "__main__":
    B = 2
    embed_dims = [64, 32, 16]     # [C(x3), C(x2), C(x1)] (scaled-down defaults)
    inter_dim = 32
    compress_c = 16               # rfb=False
    H = W = 16

    key = jax.random.PRNGKey(0)
    k1, k2, k3, kp = jax.random.split(key, 4)
    x1 = jax.random.normal(k1, (B, embed_dims[2], H, W), jnp.float32)
    x2 = jax.random.normal(k2, (B, embed_dims[1], H // 2, W // 2), jnp.float32)
    x3 = jax.random.normal(k3, (B, embed_dims[0], H // 4, W // 4), jnp.float32)

    params = make_params(kp, embed_dims, inter_dim, compress_c, H, W)

    out = taff_pallas(x1, x2, x3, params, tile_rows=8)   # 2 spatial row-tiles
    out = jax.block_until_ready(out)

    ref = taff_reference(x1, x2, x3, params)
    np.testing.assert_allclose(np.asarray(out), np.asarray(ref),
                               rtol=2e-2, atol=2e-2)
    print("KERNEL_OK")
</pallas_src>

<mosaic_0001>
module attributes {stable_mosaic.version = 11 : i64} {
  func.func @_probe_kernel(%arg0: i32, %arg1: memref<8x128xf32, #tpu.memory_space<vmem>>, %arg2: memref<8x128xf32, #tpu.memory_space<vmem>>) attributes {dimension_semantics = [#tpu.dimension_semantics<arbitrary>], iteration_bounds = array<i64: 2>, scalar_prefetch = 0 : i64, scratch_operands = 0 : i64, tpu.core_type = #tpu.core_type<tc>, window_params = [{pipeline_mode = #tpu.pipeline_mode<synchronous>, transform_indices = @transform_0, window_bounds = array<i64: 8, 128>}, {transform_indices = @transform_1, window_bounds = array<i64: 8, 128>}]} {
    %c0 = arith.constant 0 : index
    %c0_0 = arith.constant 0 : index
    %0 = vector.load %arg1[%c0, %c0_0] : memref<8x128xf32, #tpu.memory_space<vmem>>, vector<8x128xf32>
    %cst = arith.constant 1.000000e+00 : f32
    %1 = vector.broadcast %cst : f32 to vector<8x128xf32>
    %2 = arith.addf %0, %1 : vector<8x128xf32>
    %c0_1 = arith.constant 0 : index
    %c0_2 = arith.constant 0 : index
    %3 = vector.load %arg2[%c0_1, %c0_2] : memref<8x128xf32, #tpu.memory_space<vmem>>, vector<8x128xf32>
    tpu.vector_store %arg2[%c0_1, %c0_2], %2 {strides = array<i32>} : memref<8x128xf32, #tpu.memory_space<vmem>>, vector<8x128xf32>,
    return
  }
  func.func @transform_0(%arg0: i32) -> (i32, i32) {
    %c0_i32 = arith.constant 0 : i32
    %c0_i32_0 = arith.constant 0 : i32
    return %arg0, %c0_i32 : i32, i32
  }
  func.func @transform_1(%arg0: i32) -> (i32, i32) {
    %c0_i32 = arith.constant 0 : i32
    %c0_i32_0 = arith.constant 0 : i32
    return %arg0, %c0_i32 : i32, i32
  }
}

module attributes {stable_mosaic.version = 11 : i64} {
  func.func @_conv_upw_kernel(%arg0: i32, %arg1: i32, %arg2: memref<1x8x8x32xbf16, #tpu.memory_space<vmem>>, %arg3: memref<32x32xbf16, #tpu.memory_space<vmem>>, %arg4: memref<1x32xf32, #tpu.memory_space<vmem>>, %arg5: memref<16x8xbf16, #tpu.memory_space<vmem>>, %arg6: memref<1x8x16x32xbf16, #tpu.memory_space<vmem>>) attributes {dimension_semantics = [#tpu.dimension_semantics<parallel>, #tpu.dimension_semantics<parallel>], iteration_bounds = array<i64: 2, 1>, scalar_prefetch = 0 : i64, scratch_operands = 0 : i64, tpu.core_type = #tpu.core_type<tc>, window_params = [{transform_indices = @transform_0, window_bounds = array<i64: 1, 8, 8, 32>}, {pipeline_mode = #tpu.pipeline_mode<synchronous>, transform_indices = @transform_1, window_bounds = array<i64: 32, 32>}, {pipeline_mode = #tpu.pipeline_mode<synchronous>, transform_indices = @transform_2, window_bounds = array<i64: 1, 32>}, {pipeline_mode = #tpu.pipeline_mode<synchronous>, transform_indices = @transform_3, window_bounds = array<i64: 16, 8>}, {transform_indices = @transform_4, window_bounds = array<i64: 1, 8, 16, 32>}]} {
    %c0 = arith.constant 0 : index
    %c0_0 = arith.constant 0 : index
    %c0_1 = arith.constant 0 : index
    %c0_2 = arith.constant 0 : index
    %0 = vector.load %arg2[%c0, %c0_0, %c0_1, %c0_2] : memref<1x8x8x32xbf16, #tpu.memory_space<vmem>>, vector<1x8x8x32xbf16>
    %1 = vector.shape_cast %0 : vector<1x8x8x32xbf16> to vector<8x8x32xbf16>
    %2 = vector.shape_cast %1 : vector<8x8x32xbf16> to vector<64x32xbf16>
    %c0_3 = arith.constant 0 : index
    %c0_4 = arith.constant 0 : index
    %3 = vector.load %arg3[%c0_3, %c0_4] : memref<32x32xbf16, #tpu.memory_space<vmem>>, vector<32x32xbf16>
    %cst = arith.constant dense<0.000000e+00> : vector<64x32xf32>
    %4 = tpu.matmul %2, %3, %cst {dimension_numbers = #tpu.dot_dimension_numbers<[1], [0], [0], [1], [0, 0, 1, 1], [], []>} : vector<64x32xbf16>, vector<32x32xbf16>, vector<64x32xf32> -> vector<64x32xf32>
    %c0_5 = arith.constant 0 : index
    %c0_6 = arith.constant 0 : index
    %5 = vector.load %arg4[%c0_5, %c0_6] : memref<1x32xf32, #tpu.memory_space<vmem>>, vector<1x32xf32>
    %6 = vector.broadcast %5 : vector<1x32xf32> to vector<64x32xf32>
    %7 = arith.addf %4, %6 : vector<64x32xf32>
    %cst_7 = arith.constant 1.000000e-01 : f32
    %8 = vector.broadcast %cst_7 : f32 to vector<64x32xf32>
    %9 = arith.mulf %8, %7 : vector<64x32xf32>
    %10 = arith.maximumf %7, %9 : vector<64x32xf32>
    %11 = vector.shape_cast %10 : vector<64x32xf32> to vector<8x8x32xf32>
    %12 = arith.truncf %11 : vector<8x8x32xf32> to vector<8x8x32xbf16>
    %c0_8 = arith.constant 0 : index
    %c0_9 = arith.constant 0 : index
    %13 = vector.load %arg5[%c0_8, %c0_9] : memref<16x8xbf16, #tpu.memory_space<vmem>>, vector<16x8xbf16>
    %14 = vector.shape_cast %13 : vector<16x8xbf16> to vector<1x16x8xbf16>
    %15 = vector.broadcast %14 : vector<1x16x8xbf16> to vector<8x16x8xbf16>
    "tpu.trace_start"() <{level = 10 : i32, message = "hWw,hwd->hWd"}> : () -> ()
    %cst_10 = arith.constant dense<0.000000e+00> : vector<8x16x32xf32>
    %16 = tpu.matmul %15, %12, %cst_10 {dimension_numbers = #tpu.dot_dimension_numbers<[2], [1], [1], [2], [0, 0, 0, 1, 1, 2], [0], [0]>} : vector<8x16x8xbf16>, vector<8x8x32xbf16>, vector<8x16x32xf32> -> vector<8x16x32xf32>
    "tpu.trace_stop"() : () -> ()
    %17 = arith.truncf %16 : vector<8x16x32xf32> to vector<8x16x32xbf16>
    %c0_11 = arith.constant 0 : index
    %c0_12 = arith.constant 0 : index
    %c0_13 = arith.constant 0 : index
    %c0_14 = arith.constant 0 : index
    %18 = vector.load %arg6[%c0_11, %c0_12, %c0_13, %c0_14] : memref<1x8x16x32xbf16, #tpu.memory_space<vmem>>, vector<1x8x16x32xbf16>
    %19 = vector.shape_cast %18 : vector<1x8x16x32xbf16> to vector<8x16x32xbf16>
    %20 = vector.shape_cast %17 : vector<8x16x32xbf16> to vector<1x8x16x32xbf16>
    tpu.vector_store %arg6[%c0_11, %c0_12, %c0_13, %c0_14], %20 {strides = array<i32>} : memref<1x8x16x32xbf16, #tpu.memory_space<vmem>>, vector<1x8x16x32xbf16>,
    return
  }
  func.func @transform_0(%arg0: i32, %arg1: i32) -> (i32, i32, i32, i32) {
    %c0_i32 = arith.constant 0 : i32
    %c0_i32_0 = arith.constant 0 : i32
    %c0_i32_1 = arith.constant 0 : i32
    return %arg0, %arg1, %c0_i32, %c0_i32_0 : i32, i32, i32, i32
  }
  func.func @transform_1(%arg0: i32, %arg1: i32) -> (i32, i32) {
    %c0_i32 = arith.constant 0 : i32
    %c0_i32_0 = arith.constant 0 : i32
    %c0_i32_1 = arith.constant 0 : i32
    return %c0_i32, %c0_i32_0 : i32, i32
  }
  func.func @transform_2(%arg0: i32, %arg1: i32) -> (i32, i32) {
    %c0_i32 = arith.constant 0 : i32
    %c0_i32_0 = arith.constant 0 : i32
    %c0_i32_1 = arith.constant 0 : i32
    return %c0_i32, %c0_i32_0 : i32, i32
  }
  func.func @transform_3(%arg0: i32, %arg1: i32) -> (i32, i32) {
    %c0_i32 = arith.constant 0 : i32
    %c0_i32_0 = arith.constant 0 : i32
    %c0_i32_1 = arith.constant 0 : i32
    return %c0_i32, %c0_i32_0 : i32, i32
  }
  func.func @transform_4(%arg0: i32, %arg1: i32) -> (i32, i32, i32, i32) {
    %c0_i32 = arith.constant 0 : i32
    %c0_i32_0 = arith.constant 0 : i32
    %c0_i32_1 = arith.constant 0 : i32
    return %arg0, %arg1, %c0_i32, %c0_i32_0 : i32, i32, i32, i32
  }
}

</mosaic_0001>

<bundles_post_ra>
// kernel: tpu_custom_call.1
= control target key start
LH: loop header
LB: loop body
LE: loop exit
PB: predicated region body
PF: predicated region fallthrough
CT: control target
= control target key end

     0   :  { %6 = vsyncpa [#allocation3], 0  ;;  %s499_s0 = inlined_call_operand.hbm [shape: f32[16,128], index: 0, kind: input, shape index: {}]   ;;  %s500_s1 = inlined_call_operand.hbm [shape: f32[16,128], index: 1, kind: output, shape index: {}]  }
   0x1   :  { %7 = vsyncpa [#allocation4], 0 }
   0x2   :  { %9 = vsyncpa [#allocation4 + $0x1], 0  ;;  %s358_s6 = smov 0   ;;  %s360_s7 = smov 0  }
   0x3   :  { %s362_s8 = smov 0   ;;  %s364_s9 = smov 0  }
   0x4 LB: > { %s379_s10 = sadd.s32 4294967295, %s344_s9   ;;  %s193_s11 = sadd.s32 4294967294, %s344_s9   ;;  %s344_s9 = sphi %s364_s9, %s517_s9   ;;  %s340_s8 = sphi %s362_s8, %s516_s8   ;;  %s336_s7 = sphi %s360_s7, %s515_s7   ;;  %s332_s6 = sphi %s358_s6, %s514_s6  }
   0x5   : > { %s383_s12 = sadd.s32 1, %s344_s9   ;;  %s22_s13 = sadd.s32 1, %s340_s8 }
   0x6   : > { %s19_s14 = ssub.s32 %s344_s9, %s383_s12  ;;  %p35_p0 = scmp.ne.s32.totalorder %s336_s7, %s332_s6 }
   0x7   : > { %p20_p1 = scmp.eq.s32.totalorder %s19_s14, 0  ;;  %p36_p2 = scmp.eq.s32.totalorder %s379_s10, 0 }
   0x8   : > { %p58_p3 = scmp.ne.s32.totalorder %s340_s8, %s336_s7  ;;  %p59_p4 = scmp.eq.s32.totalorder %s379_s10, 1 }
   0x9   : > { %s395_s15 = scalar_select %p20_p1, %s340_s8, %s22_s13  }
   0xa   : > { %p397_p5 = por %p59_p4, %p58_p3  ;;  %p65_p6 = scmp.eq.s32.totalorder %s193_s11, 1 }
   0xb   : > { %p194_p7 = scmp.ge.s32.totalorder %s344_s9, 1  ;;  %p402_p8 = por %p36_p2, %p35_p0 }
   0xc   : > { %s505_s16 = scalar_select %p397_p5, 1, 0 }
   0xd   : > { %s506_s17 = scalar_select %p402_p8, 1, 0 }
   0xe   : > { %p72_p9 = scmp.lt.s32.totalorder %s344_s9, 3  ;;  %p407_p10 = por %p65_p6, %p35_p0 }
   0xf   : > { %s195_s19 = sshll.u32 %s379_s10, 7  ;;  %s346_s21 = smov [#allocation2]  }
  0x10   : > { %s507_s18 = scalar_select %p407_p10, 1, 0 }
  0x11   : > { %p412_p11 = pnand %p194_p7, %p72_p9  ;;  %s87_s22 = sshll.u32 %s346_s21, 4  ;;  %s88_s22 = int_to_ptr.vmem [resolvable:$true] %s87_s22 }
  0x12   : > { %s85_s25 = scalar_lea.hbm %s499_s0, %s195_s19  ;;  %s253_s30 = scalar_lea.hbm %s499_s0, 256 }
  0x13   : > { %s508_s20 = scalar_select %p412_p11, 1, 0 }
  0x14   : > { %p206_p12 = pneg %p412_p11  ;;  %s248_s27 = scalar_lea.hbm %s85_s25, 128 }
  0x15   : > { %p249_p0 = scmp.ne.s32.totalorder %s85_s25, %s248_s27  ;;  %p254_p4 = scmp.lt.u32.totalorder %s85_s25, %s499_s0 }
  0x16   : > { %p425_p13 = pnand %p206_p12, %p402_p8  ;;  %p255_p6 = scmp.lt.u32.totalorder %s253_s30, %s248_s27 }
  0x17   : > { %p257_p9 = scmp.lt.u32.totalorder %s248_s27, %s85_s25 }
  0x18   : > { %p250_p1 = pneg %p425_p13  ;;  %p256_p7 = por %p255_p6, %p254_p4 }
  0x1a   : > { %p251_p2 = pnand %p250_p1, %p249_p0  ;;  %p258_p12 = por %p257_p9, %p256_p7 }
  0x1c   : > { %p252_p3 = pneg %p251_p2 }
  0x1e   : > { %p259_p10 = pnand %p258_p12, %p252_p3 }
  0x20   : > { %262 = shalt.err (!%p259_p10)
}
  0x21   : > { %s263_s4 = scalar_lea.vmem %s88_s22, 128  ;;  %p271_p8 = scmp.lt.s32.totalorder %s88_s22, %s88_s22 }
  0x22   : > { %p264_p5 = scmp.ne.s32.totalorder %s88_s22, %s263_s4  ;;  %p272_p11 = scmp.lt.s32.totalorder %s263_s4, %s263_s4 }
  0x24   : > { %p266_p0 = pnand %p264_p5, %p250_p1  ;;  %p273_p4 = por %p272_p11, %p271_p8 }
  0x26   : > { %p267_p2 = pneg %p266_p0 }
  0x28   : > { %p274_p6 = pnand %p273_p4, %p267_p2 }
  0x2a   : > { %277 = shalt.err (!%p274_p6)
}
  0x2b   : > { %209 = dma.hbm_to_vmem [thread:$0]  (!%p425_p13), %s85_s25, 128, %s88_s22, [#allocation3]  }
  0x2c   : > { %p510_p7 = scmp.ne.s32.totalorder %s508_s20, 0 }
  0x2d   : > { %p511_p10 = scmp.ne.s32.totalorder (!%p510_p7), %s506_s17, 0 }
  0x2e   : > { %100 = sbr.rel (%p510_p7) target bundleno = 80 (0x50), region = 24 }
  0x35   : > { %323 = dma.done.wait (%p511_p10), [#allocation3], 128  }
  0x36   : > { %325 = vsyncadd (%p511_p10), [#allocation3], 4294967168  ;;  %s112_s5 = sand.u32 1, %s336_s7   ;;  %v115_v0 = vld [vmem:[#allocation2] sm:$0xff]  ;;  %s457_s20 = scalar_lea.hbm %s500_s1, %s195_s19 }
  0x37   : > { %s197_s11 = sshll.u32 %s112_s5, 3  ;;  %v116_v1 = vadd.f32 1.0, %v115_v0  ;;  %s119_s17 = scalar_lea.sflag [#allocation4], %s112_s5 }
  0x38   : > { %s114_s13 = scalar_lea.vmem [#allocation5], %s197_s11  ;;  %p512_p8 = scmp.ne.s32.totalorder %s505_s16, 0 }
  0x39   : > { %s132_s14 = sshll.u32 %s114_s13, 4  ;;  %117 = vst [vmem:[%s114_s13] sm:$0xff] %v116_v1  ;;  %s347_s24 = smov [#allocation5]   ;;  %s459_s14 = int_to_ptr.vmem [resolvable:$true] %s132_s14 }
  0x3a   : > { %s278_s23 = scalar_lea.vmem %s459_s14, 128  ;;  %s282_s10 = sshll.u32 %s347_s24, 4  ;;  %s283_s10 = int_to_ptr.vmem [resolvable:$false] %s282_s10 }
  0x3b   : > { %p279_p5 = scmp.ne.s32.totalorder %s459_s14, %s278_s23  ;;  %s284_s25 = scalar_lea.vmem %s283_s10, 256 }
  0x3c   : > { %p285_p1 = scmp.lt.s32.totalorder %s459_s14, %s283_s10  ;;  %p286_p3 = scmp.lt.s32.totalorder %s284_s25, %s278_s23 }
  0x3d   : > { %p280_p11 = pnand %p279_p5, %p512_p8 }
  0x3e   : > { %p287_p9 = por %p286_p3, %p285_p1 }
  0x3f   : > { %p281_p13 = pneg %p280_p11 }
  0x41   : > { %p288_p12 = pnand %p287_p9, %p281_p13 }
  0x43   : > { %291 = shalt.err (!%p288_p12)
}
  0x44   : > { %s292_s19 = scalar_lea.hbm %s457_s20, 128  ;;  %s296_s28 = scalar_lea.hbm %s500_s1, 256 }
  0x45   : > { %p293_p0 = scmp.ne.s32.totalorder %s457_s20, %s292_s19  ;;  %p297_p6 = scmp.lt.u32.totalorder %s457_s20, %s500_s1 }
  0x46   : > { %p298_p7 = scmp.lt.u32.totalorder %s296_s28, %s292_s19  ;;  %p300_p5 = scmp.lt.u32.totalorder %s292_s19, %s457_s20 }
  0x47   : > { %p294_p2 = pnand %p293_p0, %p512_p8 }
  0x48   : > { %p299_p10 = por %p298_p7, %p297_p6 }
  0x49   : > { %p295_p4 = pneg %p294_p2 }
  0x4a   : > { %p301_p11 = por %p300_p5, %p299_p10 }
  0x4c   : > { %p302_p13 = pnand %p301_p11, %p295_p4 }
  0x4e   : > { %305 = shalt.err (!%p302_p13)
}
  0x4f   : > { %204 = dma.vmem_to_hbm [thread:$0]  (%p512_p8), %s459_s14, 128, %s457_s20, %s119_s17  }
  0x50 PF: > { %p214_p1 = scmp.ge.s32.totalorder %s344_s9, 2  ;;  %s144_s2 = sand.u32 1, %s332_s6  }
  0x51   : > { %p513_p3 = scmp.ne.s32.totalorder %s507_s18, 0  ;;  %s145_s3 = scalar_lea.sflag [#allocation4], %s144_s2 }
  0x53   : > { %p211_p9 = pnand %p214_p1, %p513_p3 }
  0x55   : > { %327 = dma.done.wait (!%p211_p9), %s145_s3, 128  }
  0x56   : > { %329 = vsyncadd (!%p211_p9), %s145_s3, 4294967168  ;;  %p12_p12 = scmp.ge.s32.totalorder %s383_s12, 4   ;;  %s514_s6 = smov %s336_s7 }
  0x57   : > { %s515_s7 = smov %s340_s8  ;;  %s516_s8 = smov %s395_s15 }
  0x58   : > { %s517_s9 = smov %s383_s12  ;;  %14 = sbr.rel (!%p12_p12) target bundleno = 4 (0x4), region = 62 }
  0x5f   :  { %150 = vsyncpa [#allocation3], 1 }
  0x60   :  { %152 = vsyncpa [#allocation3 + $0x1], 1 }
  0x61   :  { %153 = vsyncpa [#allocation4], 1 }
  0x62   :  { %155 = vsyncpa [#allocation4 + $0x1], 1 }

// kernel: tpu_custom_call.1
= control target key start
LH: loop header
LB: loop body
LE: loop exit
PB: predicated region body
PF: predicated region fallthrough
CT: control target
= control target key end

     0   :  { %9 = vsyncpa [#allocation3], 0  ;;  %s1690_s0 = inlined_call_operand.hbm [shape: bf16[2,8,8,32], index: 0, kind: input, shape index: {}]   ;;  %s1691_s1 = inlined_call_operand.hbm [shape: bf16[32,32], index: 1, kind: input, shape index: {}]   ;;  %s1692_s2 = inlined_call_operand.vmem [shape: f32[1,32], index: 2, kind: input, shape index: {}]   ;;  %s1693_s3 = inlined_call_operand.vmem [shape: bf16[16,8], index: 3, kind: input, shape index: {}]   ;;  %s1694_s4 = inlined_call_operand.hbm [shape: bf16[2,8,16,32], index: 4, kind: output, shape index: {}]  }
   0x1   :  { %11 = vsyncpa [#allocation3 + $0x1], 0 }
   0x2   :  { %12 = vsyncpa [#allocation6], 0 }
   0x3   :  { %13 = vsyncpa [#allocation4], 0 }
   0x4   :  { %15 = vsyncpa [#allocation4 + $0x1], 0  ;;  %s1383_s15 = smov 0   ;;  %s1385_s16 = smov 0  }
   0x5   :  { %s1387_s17 = smov 0   ;;  %s1389_s18 = smov 0  }
   0x6   :  { %s1391_s19 = smov 0   ;;  %s1393_s20 = smov 0  }
   0x7 LB: > { %s964_s21 = sadd.s32 4294967295, %s1347_s20   ;;  %s965_s22 = sadd.s32 4294967294, %s1347_s20   ;;  %s1347_s20 = sphi %s1393_s20, %s21_s20   ;;  %s1343_s19 = sphi %s1391_s19, %s1718_s19   ;;  %s1339_s18 = sphi %s1389_s18, %s1717_s18   ;;  %s1335_s17 = sphi %s1387_s17, %s1716_s17   ;;  %s1331_s16 = sphi %s1385_s16, %s1715_s16   ;;  %s1327_s15 = sphi %s1383_s15, %s1714_s15  }
   0x8   : > { %p55_p0 = scmp.ne.s32.totalorder %s1331_s16, %s1327_s15  ;;  %p1417_p1 = scmp.eq.s32.totalorder %s964_s21, 0 }
   0x9   : > { %p1421_p2 = scmp.eq.s32.totalorder %s964_s21, 1  ;;  %p150_p3 = scmp.eq.s32.totalorder %s965_s22, 1 }
   0xa   : > { %s1699_s23 = scalar_select %p1417_p1, 1, 0 }
   0xb   : > { %s1700_s24 = scalar_select %p1421_p2, 1, 0 }
   0xc   : > { %p1427_p4 = por %p1417_p1, %p55_p0  ;;  %p966_p5 = scmp.ge.s32.totalorder %s1347_s20, 1 }
   0xd   : > { %p1432_p6 = por %p150_p3, %p55_p0  ;;  %p157_p7 = scmp.lt.s32.totalorder %s1347_s20, 3 }
   0xe   : > { %s1701_s25 = scalar_select %p1427_p4, 1, 0 }
   0xf   : > { %s1702_s26 = scalar_select %p1432_p6, 1, 0 }
  0x10   : > { %p1437_p8 = pnand %p966_p5, %p157_p7  ;;  %s1349_s28 = smov [#allocation5]  }
  0x11   : > { %s169_s29 = sshll.u32 %s1349_s28, 4  ;;  %s33_s5 = sadd.s32 1, %s1343_s19  ;;  %s170_s29 = int_to_ptr.vmem [resolvable:$true] %s169_s29 }
  0x12   : > { %s1703_s27 = scalar_select %p1437_p8, 1, 0 }
  0x13   : > { %p1125_p9 = pneg %p1437_p8  ;;  %s1203_s8 = scalar_lea.hbm %s1691_s1, 256 }
  0x14   : > { %p1204_p12 = scmp.ne.s32.totalorder %s1691_s1, %s1203_s8  ;;  %p1210_p5 = scmp.lt.u32.totalorder %s1203_s8, %s1691_s1 }
  0x15   : > { %p1446_p11 = pnand %p1125_p9, %p1417_p1 }
  0x17   : > { %p1205_p13 = pneg %p1446_p11 }
  0x19   : > { %p1206_p0 = pnand %p1205_p13, %p1204_p12 }
  0x1b   : > { %p1207_p3 = pneg %p1206_p0 }
  0x1d   : > { %p1212_p7 = pnand %p1210_p5, %p1207_p3 }
  0x1f   : > { %1215 = shalt.err (!%p1212_p7)
}
  0x20   : > { %s1216_s13 = scalar_lea.vmem %s170_s29, 256  ;;  %p1224_p1 = scmp.lt.s32.totalorder %s170_s29, %s170_s29 }
  0x21   : > { %p1217_p9 = scmp.ne.s32.totalorder %s170_s29, %s1216_s13  ;;  %p1225_p4 = scmp.lt.s32.totalorder %s1216_s13, %s1216_s13 }
  0x23   : > { %p1219_p10 = pnand %p1217_p9, %p1205_p13  ;;  %p1226_p8 = por %p1225_p4, %p1224_p1 }
  0x25   : > { %p1220_p6 = pneg %p1219_p10 }
  0x27   : > { %p1227_p2 = pnand %p1226_p8, %p1220_p6 }
  0x29   : > { %1230 = shalt.err (!%p1227_p2)
}
  0x2a   : > { %s1350_s14 = smov 64   ;;  %s1351_s21 = smov 4  }
  0x2b   : > { %1128 = dma.hbm_to_vmem [thread:$0]  (!%p1446_p11), %s1691_s1, 256, %s170_s29, [#allocation6], %s1350_s14, %s1350_s14, %s1351_s21  }
  0x2c   : > { %p35_p1 = scmp.ge.s32.totalorder %s33_s5, 2  ;;  %s42_s6 = sadd.s32 1, %s1335_s17 }
  0x2d   : > { %p49_p2 = scmp.ne.s32.totalorder %s1335_s17, %s1331_s16  ;;  %p50_p4 = scmp.eq.s32.totalorder %s1347_s20, 0 }
  0x2e   : > { %s1720_s5 = smov (%p35_p1, %s33_s5), 0  ;;  %p1706_p8 = scmp.ne.s32.totalorder %s1700_s24, 0 }
  0x2f   : > { %p1476_p6 = por %p50_p4, %p49_p2  ;;  %s37_s8 = ssub.s32 %s1343_s19, %s1720_s5 }
  0x30   : > { %p1482_p10 = por %p1706_p8, %p49_p2  ;;  %p1138_p12 = scmp.lt.s32.totalorder %s1347_s20, 2 }
  0x31   : > { %p40_p11 = scmp.eq.s32.totalorder %s37_s8, 0  ;;  %s189_s29 = sand.u32 1, %s1335_s17  }
  0x32   : > { %s969_s9 = sshll.u32 %s189_s29, 5  ;;  %s1017_s11 = sshll.u32 %s1343_s19, 9 }
  0x33   : > { %s1491_s10 = scalar_select %p40_p11, %s1335_s17, %s42_s6  }
  0x34   : > { %s1497_s22 = scalar_lea.hbm %s1690_s0, %s1017_s11  ;;  %s193_s24 = scalar_lea.vmem [#allocation2], %s969_s9 }
  0x35   : > { %s202_s28 = sshll.u32 %s193_s24, 4  ;;  %p1503_p13 = pnand %p1138_p12, %p1476_p6  ;;  %s1499_s28 = int_to_ptr.vmem [resolvable:$true] %s202_s28 }
  0x36   : > { %s1507_s6 = scalar_lea.sflag [#allocation3], %s189_s29  ;;  %s1231_s12 = scalar_lea.hbm %s1497_s22, 512 }
  0x37   : > { %p1232_p0 = scmp.ne.s32.totalorder %s1497_s22, %s1231_s12  ;;  %p1233_p3 = pneg %p1503_p13 }
  0x38   : > { %s1236_s7 = scalar_lea.hbm %s1690_s0, 1024  ;;  %p1237_p9 = scmp.lt.u32.totalorder %s1497_s22, %s1690_s0 }
  0x39   : > { %p1234_p5 = pnand %p1233_p3, %p1232_p0  ;;  %p1238_p1 = scmp.lt.u32.totalorder %s1236_s7, %s1231_s12 }
  0x3a   : > { %p1240_p4 = scmp.lt.u32.totalorder %s1231_s12, %s1497_s22 }
  0x3b   : > { %p1235_p7 = pneg %p1234_p5  ;;  %p1239_p2 = por %p1238_p1, %p1237_p9 }
  0x3d   : > { %p1241_p6 = por %p1240_p4, %p1239_p2 }
  0x3f   : > { %p1242_p8 = pnand %p1241_p6, %p1235_p7 }
  0x41   : > { %1245 = shalt.err (!%p1242_p8)
}
  0x42   : > { %s1246_s29 = scalar_lea.vmem %s1499_s28, 512  ;;  %s1352_s9 = smov [#allocation2]  }
  0x43   : > { %p1247_p12 = scmp.ne.s32.totalorder %s1499_s28, %s1246_s29  ;;  %s1251_s11 = sshll.u32 %s1352_s9, 4  ;;  %s1252_s11 = int_to_ptr.vmem [resolvable:$false] %s1251_s11 }
  0x44   : > { %s1253_s13 = scalar_lea.vmem %s1252_s11, 1024  ;;  %p1254_p5 = scmp.lt.s32.totalorder %s1499_s28, %s1252_s11 }
  0x45   : > { %p1249_p11 = pnand %p1247_p12, %p1233_p3  ;;  %p1255_p9 = scmp.lt.s32.totalorder %s1253_s13, %s1246_s29 }
  0x47   : > { %p1250_p0 = pneg %p1249_p11  ;;  %p1256_p1 = por %p1255_p9, %p1254_p5 }
  0x49   : > { %p1257_p2 = pnand %p1256_p1, %p1250_p0 }
  0x4b   : > { %1260 = shalt.err (!%p1257_p2)
}
  0x4c   : > { %1132 = dma.hbm_to_vmem [thread:$0]  (!%p1503_p13), %s1497_s22, 512, %s1499_s28, %s1507_s6, %s1350_s14, %s1350_s14, %s1351_s21  }
  0x4d   : > { %p1709_p3 = scmp.ne.s32.totalorder %s1703_s27, 0 }
  0x4e   : > { %s1541_s12 = sand.u32 (!%p1709_p3), 1, %s1331_s16   ;;  %p1710_p7 = scmp.ne.s32.totalorder (!%p1709_p3), %s1701_s25, 0 }
  0x4f   : > { %214 = sbr.rel (%p1709_p3) target bundleno = 587 (0x24b), region = 36  ;;  %s973_s7 = sshll.u32 (!%p1709_p3), %s1541_s12, 5 }
  0x50   : > { %s217_s24 = scalar_lea.sflag (!%p1709_p3), [#allocation3], %s1541_s12  ;;  %s220_s29 = scalar_lea.vmem (!%p1709_p3), [#allocation2], %s973_s7 }
  0x56   : > { %1314 = dma.done.wait (%p1710_p7), %s217_s24, 512  }
  0x57   : > { %1316 = vsyncadd (%p1710_p7), %s217_s24, 4294966784  ;;  %p1711_p4 = scmp.ne.s32.totalorder %s1699_s23, 0 }
  0x59   : > { %1318 = dma.done.wait (%p1711_p4), [#allocation6], 256  }
  0x5a   : > { %1320 = vsyncadd (%p1711_p4), [#allocation6], 4294967040  ;;  %v1196_v0 = vld [vmem:[#allocation5] sm:$0xff]   ;;  %v1197_v1 = vld [vmem:[#allocation5 + $0x8] sm:$0xff]   ;;  %vm303_vm0 = vcmask 261120   ;;  %v1353_v6 = vmov 0.0  }
  0x5b   : > { %1057 = vmatprep.subr.bf16.mxu0 %v1196_v0  ;;  %v1198_v2 = vld [vmem:[%s220_s29] sm:$0xff]   ;;  %v1199_v3 = vld [vmem:[%s220_s29 + $0x8] sm:$0xff]   ;;  %v1200_v4 = vld [vmem:[%s220_s29 + $0x10] sm:$0xff]   ;;  %1069 = vmatprep.subr.bf16.mxu1 %v1353_v6  ;;  %vm1354_vm1 = vmmov 0   ;;  %vm416_vm2 = vcmask 1043456   ;;  %vm412_vm3 = vcmask 64512  }
  0x5c   : > { %1058 = vmatpush3.bf16.msra.mxu0 %v1196_v0  ;;  %1061 = vmatprep.mubr.msk.bf16.mxu0 %vm303_vm0, %v1198_v2  ;;  %v1201_v5 = vld [vmem:[%s220_s29 + $0x18] sm:$0xff]   ;;  %v976_v7 = vld [vmem:[%s1692_s2] ss:$0 sm:$0xff]  ;;  %s975_s21 = sshll.u32 %s1541_s12, 6  ;;  %vm833_vm4 = vcmask 257024   ;;  %s1034_s28 = sshll.u32 %s1339_s18, 10 }
  0x5d   : > { %1059 = vmatprep.subr.bf16.mxu0 %v1197_v1  ;;  %1071 = vmatprep.mubr.msk.bf16.mxu1 %vm1354_vm1, %v1353_v6  ;;  %v1202_v30 = vld [vmem:[%s1693_s3] sm:$0xff]   ;;  %s1600_s22 = scalar_lea.vmem [#allocation7], %s975_s21  ;;  %s1635_s11 = scalar_lea.hbm %s1694_s4, %s1034_s28 }
  0x5e   : > { %s867_s8 = sshll.u32 %s1600_s22, 4  ;;  %s851_s18 = scalar_lea.sflag [#allocation4], %s1541_s12  ;;  %s1637_s8 = int_to_ptr.vmem [resolvable:$true] %s867_s8 }
  0x5f   : > { %s1261_s13 = scalar_lea.vmem %s1637_s8, 1024  ;;  %s1355_s7 = smov [#allocation7]  }
  0x60   : > { %1060 = vmatpush3.bf16.msra.mxu0 %v1197_v1  ;;  %p1262_p13 = scmp.ne.s32.totalorder %s1637_s8, %s1261_s13  ;;  %s1265_s24 = sshll.u32 %s1355_s7, 4  ;;  %s1266_s24 = int_to_ptr.vmem [resolvable:$false] %s1265_s24 }
  0x61   : > { %1087 = vmatprep.subr.bf16.mxu0 %v1353_v6  ;;  %s1267_s29 = scalar_lea.vmem %s1266_s24, 2048  ;;  %p1268_p12 = scmp.lt.s32.totalorder %s1637_s8, %s1266_s24 }
  0x62   : > { %p1263_p6 = pnand %p1262_p13, %p1482_p10  ;;  %p1269_p11 = scmp.lt.s32.totalorder %s1267_s29, %s1261_s13 }
  0x63   : > { %1062 = vmatmul.mubr.msk.bf16.vlgmr.msra.gmra.mrb[0].mxu0 %vm303_vm0, %v1199_v3 }
  0x64   : > { %1065 = vmatprep.mubr.msk.bf16.mxu0 %vm303_vm0, %v1200_v4  ;;  %p1264_p8 = pneg %p1263_p6  ;;  %p1270_p0 = por %p1269_p11, %p1268_p12 }
  0x66   : > { %p1271_p5 = pnand %p1270_p0, %p1264_p8 }
  0x6b   : > { %1066 = vmatmul.mubr.msk.bf16.gmra.mrb[4].mxu0 %vm303_vm0, %v1201_v5 }
  0x6c   : > { %1089 = vmatprep.mubr.msk.bf16.mxu0 %vm1354_vm1, %v1353_v6 }
 0x136   : > { %v1063_v8 = vpop.f32.mrb[0].mxu0 }
 0x137   : > { %v350_v9 = vpop.f32.mrb[1].mxu0  ;;  %v359_v17 = vadd.f32 %v1063_v8, %v976_v7 }
 0x138   : > { %v351_v10 = vadd.f32 %v976_v7, %v350_v9  ;;  %v1064_v11 = vpop.f32.mrb[2].mxu0 }
 0x139   : > { %v362_v12 = vadd.f32 %v1064_v11, %v976_v7  ;;  %v353_v13 = vpop.f32.mrb[3].mxu0  ;;  %v383_v26 = vmul.f32 0.1, %v359_v17 }
 0x13a   : > { %v381_v14 = vmul.f32 0.1, %v351_v10  ;;  %v354_v15 = vadd.f32 %v976_v7, %v353_v13 }
 0x13b   : > { %v384_v16 = vmul.f32 0.1, %v362_v12  ;;  %v391_v37 = vmax.f32 %v359_v17, %v383_v26 }
 0x13c   : > { %v389_v18 = vmax.f32 %v351_v10, %v381_v14  ;;  %v382_v19 = vmul.f32 0.1, %v354_v15 }
 0x13d   : > { %v392_v20 = vmax.f32 %v362_v12, %v384_v16  ;;  %v399_v43 = vpack.c.bf16 %v391_v37, %v391_v37 }
 0x13e   : > { %v390_v21 = vmax.f32 %v354_v15, %v382_v19  ;;  %v1067_v22 = vpop.f32.mrb[4].mxu0  ;;  %v397_v23 = vpack.c.bf16 %v389_v18, %v389_v18 }
 0x13f   : > { %v400_v24 = vpack.c.bf16 %v392_v20, %v392_v20  ;;  %v366_v25 = vpop.f32.mrb[5].mxu0  ;;  %v375_v48 = vadd.f32 %v1067_v22, %v976_v7  ;;  %v506_v49 = vsel %vm416_vm2, %v399_v43, 0 }
 0x140   : > { %v398_v27 = vpack.c.bf16 %v390_v21, %v390_v21  ;;  %v1068_v28 = vpop.f32.mrb[6].mxu0  ;;  %v418_v29 = vsel %vm416_vm2, %v397_v23, 0  ;;  %v367_v34 = vadd.f32 %v976_v7, %v366_v25 }
 0x141   : > { %v378_v31 = vadd.f32 %v1068_v28, %v976_v7  ;;  %1070 = vmatpush3.bf16.msra.mxu1 %v418_v29  ;;  %v369_v32 = vpop.f32.mrb[7].mxu0  ;;  %v550_v33 = vsel %vm416_vm2, %v400_v24, 0  ;;  %v387_v52 = vmul.f32 0.1, %v375_v48 }
 0x142   : > { %v370_v35 = vadd.f32 %v976_v7, %v369_v32  ;;  %1088 = vmatpush3.bf16.msra.mxu0 %v550_v33  ;;  %1075 = vmatprep.subr.bf16.mxu1 %v1353_v6  ;;  %v462_v39 = vsel %vm416_vm2, %v398_v27, 0  ;;  %v385_v41 = vmul.f32 0.1, %v367_v34 }
 0x143   : > { %v388_v36 = vmul.f32 0.1, %v378_v31  ;;  %1099 = vmatprep.subr.bf16.mxu0 %v1353_v6  ;;  %v395_v54 = vmax.f32 %v375_v48, %v387_v52 }
 0x144   : > { %v386_v38 = vmul.f32 0.1, %v370_v35  ;;  %1072 = vmatmul.mubr.msk.bf16.vlgmr.msra.gmra.mrb[0].mxu1 %vm412_vm3, %v1202_v30  ;;  %v393_v46 = vmax.f32 %v367_v34, %v385_v41 }
 0x145   : > { %v396_v40 = vmax.f32 %v378_v31, %v388_v36  ;;  %1076 = vmatpush3.bf16.msra.mxu1 %v462_v39  ;;  %1090 = vmatmul.mubr.msk.bf16.vlgmr.msra.gmra.mrb[8].mxu0 %vm412_vm3, %v1202_v30  ;;  %v403_v55 = vpack.c.bf16 %v395_v54, %v395_v54 }
 0x146   : > { %v394_v42 = vmax.f32 %v370_v35, %v386_v38  ;;  %1077 = vmatprep.mubr.msk.bf16.mxu1 %vm1354_vm1, %v1353_v6  ;;  %1081 = vmatprep.subr.bf16.mxu1 %v1353_v6  ;;  %v401_v51 = vpack.c.bf16 %v393_v46, %v393_v46 }
 0x147   : > { %1101 = vmatprep.mubr.msk.bf16.mxu0 %vm1354_vm1, %v1353_v6  ;;  %v404_v44 = vpack.c.bf16 %v396_v40, %v396_v40  ;;  %v682_v56 = vsel %vm416_vm2, %v403_v55, 0 }
 0x148   : > { %v402_v45 = vpack.c.bf16 %v394_v42, %v394_v42  ;;  %v594_v53 = vsel %vm416_vm2, %v401_v51, 0 }
 0x149   : > { %v726_v50 = vsel %vm416_vm2, %v404_v44, 0 }
 0x14a   : > { %v638_v47 = vsel %vm416_vm2, %v402_v45, 0 }
 0x14b   : > { %1100 = vmatpush3.bf16.msra.mxu0 %v638_v47 }
 0x14c   : > { %1078 = vmatmul.mubr.msk.bf16.vlgmr.msra.gmra.mrb[4].mxu1 %vm412_vm3, %v1202_v30  ;;  %1111 = vmatprep.subr.bf16.mxu0 %v1353_v6 }
 0x14d   : > { %1082 = vmatpush3.bf16.msra.mxu1 %v506_v49  ;;  %1083 = vmatprep.mubr.msk.bf16.mxu1 %vm1354_vm1, %v1353_v6 }
 0x14e   : > { %1102 = vmatmul.mubr.msk.bf16.vlgmr.msra.gmra.mrb[12].mxu0 %vm412_vm3, %v1202_v30  ;;  %1093 = vmatprep.subr.bf16.mxu1 %v1353_v6 }
 0x14f   : > { %1112 = vmatpush3.bf16.msra.mxu0 %v726_v50  ;;  %1113 = vmatprep.mubr.msk.bf16.mxu0 %vm1354_vm1, %v1353_v6 }
 0x154   : > { %1084 = vmatmul.mubr.msk.bf16.vlgmr.msra.gmra.mrb[8].mxu1 %vm412_vm3, %v1202_v30 }
 0x155   : > { %1094 = vmatpush3.bf16.msra.mxu1 %v594_v53  ;;  %1095 = vmatprep.mubr.msk.bf16.mxu1 %vm1354_vm1, %v1353_v6 }
 0x156   : > { %1105 = vmatprep.subr.bf16.mxu1 %v1353_v6  ;;  %1114 = vmatmul.mubr.msk.bf16.vlgmr.msra.gmra.mrb[16].mxu0 %vm412_vm3, %v1202_v30 }
 0x15c   : > { %1096 = vmatmul.mubr.msk.bf16.vlgmr.msra.gmra.mrb[12].mxu1 %vm412_vm3, %v1202_v30 }
 0x15d   : > { %1106 = vmatpush3.bf16.msra.mxu1 %v682_v56  ;;  %1107 = vmatprep.mubr.msk.bf16.mxu1 %vm1354_vm1, %v1353_v6 }
 0x164   : > { %1108 = vmatmul.mubr.msk.bf16.vlgmr.msra.gmra.mrb[16].mxu1 %vm412_vm3, %v1202_v30 }
 0x217   : > { %v454_v57 = vpop.f32.mrb[0].mxu1 }
 0x218   : > { %v1018_v58 = vpack.c.bf16 %v454_v57, %v454_v57  ;;  %v1073_v59 = vpop.f32.mrb[1].mxu1  ;;  %v586_v60 = vpop.f32.mrb[8].mxu0 }
 0x219   : > { %v457_v61 = vpop.f32.mrb[2].mxu1  ;;  %v1024_v62 = vpack.c.bf16 %v586_v60, %v586_v60  ;;  %v1091_v63 = vpop.f32.mrb[9].mxu0 }
 0x21a   : > { %834 = vst.msk [vmem:[%s1600_s22] sm:$0xf] %vm833_vm4, %v1018_v58  ;;  %v1019_v0 = vpack.c.bf16 %v457_v61, %v457_v61  ;;  %v1074_v1 = vpop.f32.mrb[3].mxu1  ;;  %v589_v2 = vpop.f32.mrb[10].mxu0 }
 0x21b   : > { %840 = vst.msk [vmem:[%s1600_s22 + $0x18] sm:$0xf] %vm833_vm4, %v1024_v62  ;;  %v1025_v3 = vpack.c.bf16 %v589_v2, %v589_v2  ;;  %v1092_v4 = vpop.f32.mrb[11].mxu0 }
 0x21c   : > { %835 = vst.msk [vmem:[%s1600_s22 + $0x4] sm:$0xf] %vm833_vm4, %v1019_v0 }
 0x21d   : > { %841 = vst.msk [vmem:[%s1600_s22 + $0x1c] sm:$0xf] %vm833_vm4, %v1025_v3 }
 0x21f   : > { %v498_v5 = vpop.f32.mrb[4].mxu1 }
 0x220   : > { %v1020_v6 = vpack.c.bf16 %v498_v5, %v498_v5  ;;  %v1079_v7 = vpop.f32.mrb[5].mxu1 }
 0x221   : > { %v501_v8 = vpop.f32.mrb[6].mxu1  ;;  %v674_v9 = vpop.f32.mrb[12].mxu0 }
 0x222   : > { %836 = vst.msk [vmem:[%s1600_s22 + $0x8] sm:$0xf] %vm833_vm4, %v1020_v6  ;;  %v1021_v10 = vpack.c.bf16 %v501_v8, %v501_v8  ;;  %v1080_v11 = vpop.f32.mrb[7].mxu1  ;;  %v1028_v12 = vpack.c.bf16 %v674_v9, %v674_v9  ;;  %v1103_v13 = vpop.f32.mrb[13].mxu0 }
 0x223   : > { %v677_v14 = vpop.f32.mrb[14].mxu0 }
 0x224   : > { %837 = vst.msk [vmem:[%s1600_s22 + $0xc] sm:$0xf] %vm833_vm4, %v1021_v10  ;;  %844 = vst.msk [vmem:[%s1600_s22 + $0x28] sm:$0xf] %vm833_vm4, %v1028_v12  ;;  %v1029_v15 = vpack.c.bf16 %v677_v14, %v677_v14  ;;  %v1104_v16 = vpop.f32.mrb[15].mxu0 }
 0x226   : > { %845 = vst.msk [vmem:[%s1600_s22 + $0x2c] sm:$0xf] %vm833_vm4, %v1029_v15 }
 0x227   : > { %v542_v17 = vpop.f32.mrb[8].mxu1 }
 0x228   : > { %v1022_v18 = vpack.c.bf16 %v542_v17, %v542_v17  ;;  %v1085_v19 = vpop.f32.mrb[9].mxu1 }
 0x229   : > { %v545_v20 = vpop.f32.mrb[10].mxu1  ;;  %v762_v21 = vpop.f32.mrb[16].mxu0 }
 0x22a   : > { %838 = vst.msk [vmem:[%s1600_s22 + $0x10] sm:$0xf] %vm833_vm4, %v1022_v18  ;;  %v1023_v22 = vpack.c.bf16 %v545_v20, %v545_v20  ;;  %v1086_v23 = vpop.f32.mrb[11].mxu1  ;;  %v1032_v24 = vpack.c.bf16 %v762_v21, %v762_v21  ;;  %v1115_v25 = vpop.f32.mrb[17].mxu0 }
 0x22b   : > { %v765_v26 = vpop.f32.mrb[18].mxu0 }
 0x22c   : > { %839 = vst.msk [vmem:[%s1600_s22 + $0x14] sm:$0xf] %vm833_vm4, %v1023_v22  ;;  %848 = vst.msk [vmem:[%s1600_s22 + $0x38] sm:$0xf] %vm833_vm4, %v1032_v24  ;;  %v1033_v27 = vpack.c.bf16 %v765_v26, %v765_v26  ;;  %v1116_v28 = vpop.f32.mrb[19].mxu0 }
 0x22e   : > { %849 = vst.msk [vmem:[%s1600_s22 + $0x3c] sm:$0xf] %vm833_vm4, %v1033_v27 }
 0x22f   : > { %v630_v29 = vpop.f32.mrb[12].mxu1 }
 0x230   : > { %v1026_v30 = vpack.c.bf16 %v630_v29, %v630_v29  ;;  %v1097_v31 = vpop.f32.mrb[13].mxu1 }
 0x231   : > { %v633_v32 = vpop.f32.mrb[14].mxu1 }
 0x232   : > { %842 = vst.msk [vmem:[%s1600_s22 + $0x20] sm:$0xf] %vm833_vm4, %v1026_v30  ;;  %v1027_v33 = vpack.c.bf16 %v633_v32, %v633_v32  ;;  %v1098_v34 = vpop.f32.mrb[15].mxu1 }
 0x234   : > { %843 = vst.msk [vmem:[%s1600_s22 + $0x24] sm:$0xf] %vm833_vm4, %v1027_v33 }
 0x237   : > { %v718_v35 = vpop.f32.mrb[16].mxu1 }
 0x238   : > { %v1030_v36 = vpack.c.bf16 %v718_v35, %v718_v35  ;;  %v1109_v37 = vpop.f32.mrb[17].mxu1 }
 0x239   : > { %v721_v38 = vpop.f32.mrb[18].mxu1 }
 0x23a   : > { %846 = vst.msk [vmem:[%s1600_s22 + $0x30] sm:$0xf] %vm833_vm4, %v1030_v36  ;;  %v1031_v39 = vpack.c.bf16 %v721_v38, %v721_v38  ;;  %v1110_v40 = vpop.f32.mrb[19].mxu1 }
 0x23c   : > { %847 = vst.msk [vmem:[%s1600_s22 + $0x34] sm:$0xf] %vm833_vm4, %v1031_v39 }
 0x23d   : > { %1274 = shalt.err (!%p1271_p5)
}
 0x23e   : > { %s1275_s23 = scalar_lea.hbm %s1635_s11, 1024  ;;  %s1279_s14 = scalar_lea.hbm %s1694_s4, 2048 }
 0x23f   : > { %p1276_p9 = scmp.ne.s32.totalorder %s1635_s11, %s1275_s23  ;;  %p1280_p3 = scmp.lt.u32.totalorder %s1635_s11, %s1694_s4 }
 0x240   : > { %p1281_p7 = scmp.lt.u32.totalorder %s1279_s14, %s1275_s23  ;;  %p1283_p13 = scmp.lt.u32.totalorder %s1275_s23, %s1635_s11 }
 0x241   : > { %p1277_p1 = pnand %p1276_p9, %p1482_p10 }
 0x242   : > { %p1282_p4 = por %p1281_p7, %p1280_p3 }
 0x243   : > { %p1278_p2 = pneg %p1277_p1 }
 0x244   : > { %p1284_p6 = por %p1283_p13, %p1282_p4 }
 0x246   : > { %p1285_p8 = pnand %p1284_p6, %p1278_p2 }
 0x248   : > { %1288 = shalt.err (!%p1285_p8)
}
 0x249   : > { %s1356_s28 = smov 64   ;;  %s1357_s6 = smov 4  }
 0x24a   : > { %1123 = dma.vmem_to_hbm [thread:$0]  (%p1482_p10), %s1637_s8, 1024, %s1635_s11, %s851_s18, %s1356_s28, %s1356_s28, %s1357_s6  }
 0x24b PF: > { %s882_s9 = sand.u32 1, %s1327_s15   ;;  %p1712_p12 = scmp.ne.s32.totalorder %s1702_s26, 0 }
 0x24c   : > { %p1713_p11 = scmp.ge.s32.totalorder %s1347_s20, 2  ;;  %s883_s13 = scalar_lea.sflag [#allocation4], %s882_s9 }
 0x24e   : > { %p1134_p0 = pnand %p1713_p11, %p1712_p12 }
 0x250   : > { %1322 = dma.done.wait (!%p1134_p0), %s883_s13, 1024  }
 0x251   : > { %1324 = vsyncadd (!%p1134_p0), %s883_s13, 4294966272  ;;  %s21_s20 = sadd.s32 1, %s1347_s20   ;;  %s1714_s15 = smov %s1331_s16 }
 0x252   : > { %p18_p5 = scmp.ge.s32.totalorder %s21_s20, 4   ;;  %s1715_s16 = smov %s1335_s17 }
 0x253   : > { %s1716_s17 = smov %s1491_s10  ;;  %s1717_s18 = smov %s1343_s19 }
 0x254   : > { %s1718_s19 = smov %s1720_s5  ;;  %20 = sbr.rel (!%p18_p5) target bundleno = 7 (0x7), region = 85 }
 0x25b   :  { %888 = vsyncpa [#allocation3], 1 }
 0x25c   :  { %890 = vsyncpa [#allocation3 + $0x1], 1 }
 0x25d   :  { %891 = vsyncpa [#allocation6], 1 }
 0x25e   :  { %892 = vsyncpa [#allocation4], 1 }
 0x25f   :  { %894 = vsyncpa [#allocation4 + $0x1], 1 }

</bundles_post_ra>
